<compile_context>
chip_gen: v7x
topology: tpu7x:2x2x1
jax: 0.10.0
libtpu: 0.0.40
codegen_flags: <defaults>
</compile_context>

<pallas_src>
import jax
import jax.numpy as jnp
from jax.experimental import pallas as pl
from jax.experimental.pallas import tpu as pltpu


def _round_up(x, m):
    return ((x + m - 1) // m) * m


def _double_q_fused_kernel(obs_ref, act_ref, w1o_ref, w1a_ref, w2_ref, w3_ref,
                           bias_ref, out_ref):
    """One batch tile: both Q-networks fused, f32 accumulation throughout."""
    hidden = w2_ref.shape[-1]

    obs = obs_ref[...]
    act = act_ref[...]

    # Layer 1 (concat-free, tile-aligned operands): (tb, 2H)
    h = (jnp.dot(obs, w1o_ref[...], preferred_element_type=jnp.float32)
         + jnp.dot(act, w1a_ref[...], preferred_element_type=jnp.float32))
    h = jnp.maximum(h + bias_ref[0:1, :], 0.0)

    # Layer 2: two dense HxH dots (no block-diagonal zeros).
    h = h.astype(w2_ref.dtype)
    h1 = jnp.dot(h[:, :hidden], w2_ref[0], preferred_element_type=jnp.float32)
    h2 = jnp.dot(h[:, hidden:], w2_ref[1], preferred_element_type=jnp.float32)
    h1 = jnp.maximum(h1 + bias_ref[1:2, :hidden], 0.0)
    h2 = jnp.maximum(h2 + bias_ref[1:2, hidden:], 0.0)

    # Heads: (tb, 1) each -> single (tb, 2) output tile (col 0 = q1, col 1 = q2).
    q1 = jnp.dot(h1.astype(w3_ref.dtype), w3_ref[0],
                 preferred_element_type=jnp.float32)
    q2 = jnp.dot(h2.astype(w3_ref.dtype), w3_ref[1],
                 preferred_element_type=jnp.float32)
    q = jnp.concatenate([q1, q2], axis=-1) + bias_ref[2:3, :2]
    out_ref[...] = q.astype(out_ref.dtype)


def pack_double_q_params(params_q1, params_q2, obs_dim,
                         param_dtype=jnp.bfloat16):
    """Pack 12 per-layer arrays into 5 dense operands.

    params_q* = (w1, b1, w2, b2, w3, b3); weights (in, out), biases (1, out).
    Returns (W1_obs, W1_act, W2, W3, bias):
      W1_obs (obs_dim, 2H), W1_act (action_dim, 2H)  -- layer-1, pre-split
      W2     (2, H, H)                               -- dense per-head stack
      W3     (2, H, 1)                               -- dense per-head stack
      bias   (3, 2H) float32                         -- rows: b1 | b2 | b3
    """
    w1a, b1a, w2a, b2a, w3a, b3a = params_q1
    w1b, b1b, w2b, b2b, w3b, b3b = params_q2
    hidden = w1a.shape[1]

    W1 = jnp.concatenate([w1a, w1b], axis=1)                 # (in, 2H)
    W1_obs = W1[:obs_dim, :]
    W1_act = W1[obs_dim:, :]

    W2 = jnp.stack([w2a, w2b], axis=0)                       # (2, H, H)
    W3 = jnp.stack([w3a, w3b], axis=0)                       # (2, H, 1)

    b1 = jnp.concatenate([b1a, b1b], axis=1)                 # (1, 2H)
    b2 = jnp.concatenate([b2a, b2b], axis=1)                 # (1, 2H)
    # NOTE: hard-codes out_dim == 1 per head (true for DoubleQCritic).
    b3 = (jnp.zeros((1, 2 * hidden), jnp.float32)
          .at[0, 0].set(b3a[0, 0]).at[0, 1].set(b3b[0, 0]))  # (1, 2H)
    bias = jnp.concatenate([b1, b2, b3], axis=0)             # (3, 2H)

    return (W1_obs.astype(param_dtype), W1_act.astype(param_dtype),
            W2.astype(param_dtype), W3.astype(param_dtype),
            bias.astype(jnp.float32))


def double_q_critic_forward(obs, action, packed_params, *, block_b=512):
    """Fused forward for both Q heads.  Returns (q1, q2), each (B, 1) f32."""
    assert obs.shape[0] == action.shape[0]
    W1o, W1a, W2, W3, bias = packed_params
    batch, obs_dim = obs.shape
    action_dim = action.shape[1]
    two_h = W1o.shape[1]
    hidden = W2.shape[-1]
    assert W1o.shape[0] == obs_dim and W1a.shape[0] == action_dim
    assert two_h == 2 * hidden

    # Cast activations to the weight dtype (bf16 halves activation DMA bytes;
    # accumulation stays f32 inside the kernel).
    obs = obs.astype(W1o.dtype)
    action = action.astype(W1a.dtype)

    # Batch tile: sublane-aligned, as large as block_b; no wrapper-side pad
    # (ragged last tile -- OOB rows are masked on write).
    tb = min(_round_up(batch, 8), block_b)
    if batch > 16 and pl.cdiv(batch, tb) < 2:
        # Keep >= 2 batch tiles so the "parallel" axis shards across v7x's 2 TCs.
        tb = _round_up(pl.cdiv(batch, 2), 8)
    grid = (pl.cdiv(batch, tb),)

    w_itemsize = jnp.dtype(W1o.dtype).itemsize
    flops = 2 * batch * ((obs_dim + action_dim) * two_h
                         + 2 * hidden * hidden + 2 * hidden)
    bytes_accessed = ((obs.size + action.size) * w_itemsize
                      + (W1o.size + W1a.size + W2.size + W3.size) * w_itemsize
                      + bias.size * 4 + batch * 2 * 4)

    out = pl.pallas_call(
        _double_q_fused_kernel,
        out_shape=jax.ShapeDtypeStruct((batch, 2), jnp.float32),
        grid_spec=pltpu.PrefetchScalarGridSpec(
            num_scalar_prefetch=0,
            grid=grid,
            in_specs=[
                pl.BlockSpec((tb, obs_dim), lambda i: (i, 0)),     # obs tile
                pl.BlockSpec((tb, action_dim), lambda i: (i, 0)),  # action tile
                pl.BlockSpec(W1o.shape, lambda i: (0, 0)),         # W1_obs (resident)
                pl.BlockSpec(W1a.shape, lambda i: (0, 0)),         # W1_act (resident)
                pl.BlockSpec(W2.shape, lambda i: (0, 0, 0)),       # W2 (resident)
                pl.BlockSpec(W3.shape, lambda i: (0, 0, 0)),       # W3 (resident)
                pl.BlockSpec(bias.shape, lambda i: (0, 0)),        # biases
            ],
            out_specs=pl.BlockSpec((tb, 2), lambda i: (i, 0)),
        ),
        compiler_params=pltpu.CompilerParams(
            dimension_semantics=("parallel",),
            vmem_limit_bytes=48 * 1024 * 1024),
        cost_estimate=pl.CostEstimate(flops=flops, transcendentals=0,
                                      bytes_accessed=bytes_accessed),
    )(obs, action, W1o, W1a, W2, W3, bias)

    return out[:, 0:1], out[:, 1:2]


def _init_mlp_params(key, in_dim, hidden_dim, out_dim):
    """Deterministic synthetic init (stand-in for utils.weight_init orthogonal).
    Weights (in, out); biases (1, out)."""
    ks = jax.random.split(key, 3)

    def layer(k, fan_in, fan_out):
        w = jax.random.normal(k, (fan_in, fan_out), jnp.float32) / jnp.sqrt(fan_in)
        b = jnp.zeros((1, fan_out), jnp.float32)
        return w, b

    w1, b1 = layer(ks[0], in_dim, hidden_dim)
    w2, b2 = layer(ks[1], hidden_dim, hidden_dim)
    w3, b3 = layer(ks[2], hidden_dim, out_dim)
    return (w1, b1, w2, b2, w3, b3)


if __name__ == "__main__":
    # Small shapes consistent with the module (hidden_depth=2 assumed).
    batch, obs_dim, action_dim, hidden_dim = 8, 16, 8, 32

    key = jax.random.PRNGKey(0)
    k_obs, k_act, k_q1, k_q2 = jax.random.split(key, 4)

    obs = jax.random.normal(k_obs, (batch, obs_dim), jnp.float32)
    action = jax.random.normal(k_act, (batch, action_dim), jnp.float32)

    params_q1 = _init_mlp_params(k_q1, obs_dim + action_dim, hidden_dim, 1)
    params_q2 = _init_mlp_params(k_q2, obs_dim + action_dim, hidden_dim, 1)

    # Pure-JAX reference of the original (unfused, f32) math.
    def ref_mlp(x, p):
        w1, b1, w2, b2, w3, b3 = p
        h = jnp.maximum(x @ w1 + b1, 0.0)
        h = jnp.maximum(h @ w2 + b2, 0.0)
        return h @ w3 + b3

    xa = jnp.concatenate([obs, action], axis=-1)
    r1, r2 = ref_mlp(xa, params_q1), ref_mlp(xa, params_q2)

    # 1) Exact-precision path (f32 params) -- matches the PyTorch module math.
    packed_f32 = pack_double_q_params(params_q1, params_q2, obs_dim,
                                      param_dtype=jnp.float32)
    q1, q2 = double_q_critic_forward(obs, action, packed_f32)
    jax.block_until_ready((q1, q2))
    assert q1.shape == (batch, 1) and q2.shape == (batch, 1)
    assert jnp.allclose(q1, r1, atol=1e-5), "q1 mismatch (f32)"
    assert jnp.allclose(q2, r2, atol=1e-5), "q2 mismatch (f32)"

    # 2) Default bandwidth-optimized path (bf16 weights/activations, f32 accum).
    packed_bf16 = pack_double_q_params(params_q1, params_q2, obs_dim)
    q1b, q2b = double_q_critic_forward(obs, action, packed_bf16)
    jax.block_until_ready((q1b, q2b))
    assert jnp.allclose(q1b, r1, atol=1e-1, rtol=1e-1), "q1 mismatch (bf16)"
    assert jnp.allclose(q2b, r2, atol=1e-1, rtol=1e-1), "q2 mismatch (bf16)"

    # TODO(synk): the nn.Module's `self.outputs` dict logging is host-side
    # bookkeeping with no kernel equivalent; the returned (q1, q2) cover it.
    print("KERNEL_OK")
</pallas_src>

<mosaic_0001>
module attributes {stable_mosaic.version = 11 : i64} {
  func.func @_double_q_fused_kernel(%arg0: i32, %arg1: memref<8x16xf32, #tpu.memory_space<vmem>>, %arg2: memref<8x8xf32, #tpu.memory_space<vmem>>, %arg3: memref<16x64xf32, #tpu.memory_space<vmem>>, %arg4: memref<8x64xf32, #tpu.memory_space<vmem>>, %arg5: memref<2x32x32xf32, #tpu.memory_space<vmem>>, %arg6: memref<2x32x1xf32, #tpu.memory_space<vmem>>, %arg7: memref<3x64xf32, #tpu.memory_space<vmem>>, %arg8: memref<8x2xf32, #tpu.memory_space<vmem>>) attributes {dimension_semantics = [#tpu.dimension_semantics<parallel>], iteration_bounds = array<i64: 1>, scalar_prefetch = 0 : i64, scratch_operands = 0 : i64, tpu.core_type = #tpu.core_type<tc>, window_params = [{transform_indices = @transform_0, window_bounds = array<i64: 8, 16>}, {transform_indices = @transform_1, window_bounds = array<i64: 8, 8>}, {pipeline_mode = #tpu.pipeline_mode<synchronous>, transform_indices = @transform_2, window_bounds = array<i64: 16, 64>}, {pipeline_mode = #tpu.pipeline_mode<synchronous>, transform_indices = @transform_3, window_bounds = array<i64: 8, 64>}, {pipeline_mode = #tpu.pipeline_mode<synchronous>, transform_indices = @transform_4, window_bounds = array<i64: 2, 32, 32>}, {pipeline_mode = #tpu.pipeline_mode<synchronous>, transform_indices = @transform_5, window_bounds = array<i64: 2, 32, 1>}, {pipeline_mode = #tpu.pipeline_mode<synchronous>, transform_indices = @transform_6, window_bounds = array<i64: 3, 64>}, {transform_indices = @transform_7, window_bounds = array<i64: 8, 2>}]} {
    %c0 = arith.constant 0 : index
    %c0_0 = arith.constant 0 : index
    %0 = vector.load %arg1[%c0, %c0_0] : memref<8x16xf32, #tpu.memory_space<vmem>>, vector<8x16xf32>
    %c0_1 = arith.constant 0 : index
    %c0_2 = arith.constant 0 : index
    %1 = vector.load %arg2[%c0_1, %c0_2] : memref<8x8xf32, #tpu.memory_space<vmem>>, vector<8x8xf32>
    %c0_3 = arith.constant 0 : index
    %c0_4 = arith.constant 0 : index
    %2 = vector.load %arg3[%c0_3, %c0_4] : memref<16x64xf32, #tpu.memory_space<vmem>>, vector<16x64xf32>
    %cst = arith.constant dense<0.000000e+00> : vector<8x64xf32>
    %3 = tpu.matmul %0, %2, %cst {dimension_numbers = #tpu.dot_dimension_numbers<[1], [0], [0], [1], [0, 0, 1, 1], [], []>} : vector<8x16xf32>, vector<16x64xf32>, vector<8x64xf32> -> vector<8x64xf32>
    %c0_5 = arith.constant 0 : index
    %c0_6 = arith.constant 0 : index
    %4 = vector.load %arg4[%c0_5, %c0_6] : memref<8x64xf32, #tpu.memory_space<vmem>>, vector<8x64xf32>
    %cst_7 = arith.constant dense<0.000000e+00> : vector<8x64xf32>
    %5 = tpu.matmul %1, %4, %cst_7 {dimension_numbers = #tpu.dot_dimension_numbers<[1], [0], [0], [1], [0, 0, 1, 1], [], []>} : vector<8x8xf32>, vector<8x64xf32>, vector<8x64xf32> -> vector<8x64xf32>
    %6 = arith.addf %3, %5 : vector<8x64xf32>
    %c0_8 = arith.constant 0 : index
    %c0_9 = arith.constant 0 : index
    %7 = vector.load %arg7[%c0_8, %c0_9] : memref<3x64xf32, #tpu.memory_space<vmem>>, vector<1x64xf32>
    %8 = vector.broadcast %7 : vector<1x64xf32> to vector<8x64xf32>
    %9 = arith.addf %6, %8 : vector<8x64xf32>
    %cst_10 = arith.constant 0.000000e+00 : f32
    %10 = vector.broadcast %cst_10 : f32 to vector<8x64xf32>
    %11 = arith.maximumf %9, %10 : vector<8x64xf32>
    %12 = vector.extract_strided_slice %11 {offsets = [0, 0], sizes = [8, 32], strides = [1, 1]} : vector<8x64xf32> to vector<8x32xf32>
    %c0_11 = arith.constant 0 : index
    %c0_12 = arith.constant 0 : index
    %c0_13 = arith.constant 0 : index
    %13 = vector.load %arg5[%c0_11, %c0_12, %c0_13] : memref<2x32x32xf32, #tpu.memory_space<vmem>>, vector<1x32x32xf32>
    %14 = vector.shape_cast %13 : vector<1x32x32xf32> to vector<32x32xf32>
    %cst_14 = arith.constant dense<0.000000e+00> : vector<8x32xf32>
    %15 = tpu.matmul %12, %14, %cst_14 {dimension_numbers = #tpu.dot_dimension_numbers<[1], [0], [0], [1], [0, 0, 1, 1], [], []>} : vector<8x32xf32>, vector<32x32xf32>, vector<8x32xf32> -> vector<8x32xf32>
    %16 = vector.extract_strided_slice %11 {offsets = [0, 32], sizes = [8, 32], strides = [1, 1]} : vector<8x64xf32> to vector<8x32xf32>
    %c1 = arith.constant 1 : index
    %c0_15 = arith.constant 0 : index
    %c0_16 = arith.constant 0 : index
    %17 = vector.load %arg5[%c1, %c0_15, %c0_16] : memref<2x32x32xf32, #tpu.memory_space<vmem>>, vector<1x32x32xf32>
    %18 = vector.shape_cast %17 : vector<1x32x32xf32> to vector<32x32xf32>
    %cst_17 = arith.constant dense<0.000000e+00> : vector<8x32xf32>
    %19 = tpu.matmul %16, %18, %cst_17 {dimension_numbers = #tpu.dot_dimension_numbers<[1], [0], [0], [1], [0, 0, 1, 1], [], []>} : vector<8x32xf32>, vector<32x32xf32>, vector<8x32xf32> -> vector<8x32xf32>
    %c1_18 = arith.constant 1 : index
    %c0_19 = arith.constant 0 : index
    %20 = vector.load %arg7[%c1_18, %c0_19] : memref<3x64xf32, #tpu.memory_space<vmem>>, vector<1x32xf32>
    %21 = vector.broadcast %20 : vector<1x32xf32> to vector<8x32xf32>
    %22 = arith.addf %15, %21 : vector<8x32xf32>
    %cst_20 = arith.constant 0.000000e+00 : f32
    %23 = vector.broadcast %cst_20 : f32 to vector<8x32xf32>
    %24 = arith.maximumf %22, %23 : vector<8x32xf32>
    %c1_21 = arith.constant 1 : index
    %c32 = arith.constant 32 : index
    %25 = vector.load %arg7[%c1_21, %c32] : memref<3x64xf32, #tpu.memory_space<vmem>>, vector<1x32xf32>
    %26 = vector.broadcast %25 : vector<1x32xf32> to vector<8x32xf32>
    %27 = arith.addf %19, %26 : vector<8x32xf32>
    %cst_22 = arith.constant 0.000000e+00 : f32
    %28 = vector.broadcast %cst_22 : f32 to vector<8x32xf32>
    %29 = arith.maximumf %27, %28 : vector<8x32xf32>
    %c0_23 = arith.constant 0 : index
    %c0_24 = arith.constant 0 : index
    %c0_25 = arith.constant 0 : index
    %30 = vector.load %arg6[%c0_23, %c0_24, %c0_25] : memref<2x32x1xf32, #tpu.memory_space<vmem>>, vector<1x32x1xf32>
    %31 = vector.shape_cast %30 : vector<1x32x1xf32> to vector<32x1xf32>
    %cst_26 = arith.constant dense<0.000000e+00> : vector<8x1xf32>
    %32 = tpu.matmul %24, %31, %cst_26 {dimension_numbers = #tpu.dot_dimension_numbers<[1], [0], [0], [1], [0, 0, 1, 1], [], []>} : vector<8x32xf32>, vector<32x1xf32>, vector<8x1xf32> -> vector<8x1xf32>
    %c1_27 = arith.constant 1 : index
    %c0_28 = arith.constant 0 : index
    %c0_29 = arith.constant 0 : index
    %33 = vector.load %arg6[%c1_27, %c0_28, %c0_29] : memref<2x32x1xf32, #tpu.memory_space<vmem>>, vector<1x32x1xf32>
    %34 = vector.shape_cast %33 : vector<1x32x1xf32> to vector<32x1xf32>
    %cst_30 = arith.constant dense<0.000000e+00> : vector<8x1xf32>
    %35 = tpu.matmul %29, %34, %cst_30 {dimension_numbers = #tpu.dot_dimension_numbers<[1], [0], [0], [1], [0, 0, 1, 1], [], []>} : vector<8x32xf32>, vector<32x1xf32>, vector<8x1xf32> -> vector<8x1xf32>
    %36 = tpu.concatenate %32, %35 in 1 : vector<8x1xf32>, vector<8x1xf32> -> vector<8x2xf32>
    %c2 = arith.constant 2 : index
    %c0_31 = arith.constant 0 : index
    %37 = vector.load %arg7[%c2, %c0_31] : memref<3x64xf32, #tpu.memory_space<vmem>>, vector<1x2xf32>
    %38 = vector.broadcast %37 : vector<1x2xf32> to vector<8x2xf32>
    %39 = arith.addf %36, %38 : vector<8x2xf32>
    %c0_32 = arith.constant 0 : index
    %c0_33 = arith.constant 0 : index
    %40 = vector.load %arg8[%c0_32, %c0_33] : memref<8x2xf32, #tpu.memory_space<vmem>>, vector<8x2xf32>
    tpu.vector_store %arg8[%c0_32, %c0_33], %39 {strides = array<i32>} : memref<8x2xf32, #tpu.memory_space<vmem>>, vector<8x2xf32>,
    return
  }
  func.func @transform_0(%arg0: i32) -> (i32, i32) {
    %c0_i32 = arith.constant 0 : i32
    %c0_i32_0 = arith.constant 0 : i32
    return %arg0, %c0_i32 : i32, i32
  }
  func.func @transform_1(%arg0: i32) -> (i32, i32) {
    %c0_i32 = arith.constant 0 : i32
    %c0_i32_0 = arith.constant 0 : i32
    return %arg0, %c0_i32 : i32, i32
  }
  func.func @transform_2(%arg0: i32) -> (i32, i32) {
    %c0_i32 = arith.constant 0 : i32
    %c0_i32_0 = arith.constant 0 : i32
    %c0_i32_1 = arith.constant 0 : i32
    return %c0_i32, %c0_i32_0 : i32, i32
  }
  func.func @transform_3(%arg0: i32) -> (i32, i32) {
    %c0_i32 = arith.constant 0 : i32
    %c0_i32_0 = arith.constant 0 : i32
    %c0_i32_1 = arith.constant 0 : i32
    return %c0_i32, %c0_i32_0 : i32, i32
  }
  func.func @transform_4(%arg0: i32) -> (i32, i32, i32) {
    %c0_i32 = arith.constant 0 : i32
    %c0_i32_0 = arith.constant 0 : i32
    %c0_i32_1 = arith.constant 0 : i32
    %c0_i32_2 = arith.constant 0 : i32
    return %c0_i32, %c0_i32_0, %c0_i32_1 : i32, i32, i32
  }
  func.func @transform_5(%arg0: i32) -> (i32, i32, i32) {
    %c0_i32 = arith.constant 0 : i32
    %c0_i32_0 = arith.constant 0 : i32
    %c0_i32_1 = arith.constant 0 : i32
    %c0_i32_2 = arith.constant 0 : i32
    return %c0_i32, %c0_i32_0, %c0_i32_1 : i32, i32, i32
  }
  func.func @transform_6(%arg0: i32) -> (i32, i32) {
    %c0_i32 = arith.constant 0 : i32
    %c0_i32_0 = arith.constant 0 : i32
    %c0_i32_1 = arith.constant 0 : i32
    return %c0_i32, %c0_i32_0 : i32, i32
  }
  func.func @transform_7(%arg0: i32) -> (i32, i32) {
    %c0_i32 = arith.constant 0 : i32
    %c0_i32_0 = arith.constant 0 : i32
    return %arg0, %c0_i32 : i32, i32
  }
}

</mosaic_0001>

<bundles_post_ra>
// kernel: tpu_custom_call.1
= control target key start
LH: loop header
LB: loop body
LE: loop exit
PB: predicated region body
PF: predicated region fallthrough
CT: control target
= control target key end

     0   :  { %12 = vsyncpa [#allocation3], 0  ;;  %s943_s0 = inlined_call_operand.hbm [shape: f32[8,16], index: 0, kind: input, shape index: {}]   ;;  %s944_s1 = inlined_call_operand.hbm [shape: f32[8,8], index: 1, kind: input, shape index: {}]   ;;  %s945_s2 = inlined_call_operand.vmem [shape: f32[16,64], index: 2, kind: input, shape index: {}]   ;;  %s946_s3 = inlined_call_operand.hbm [shape: f32[8,64], index: 3, kind: input, shape index: {}]   ;;  %s947_s4 = inlined_call_operand.vmem [shape: f32[2,32,32], index: 4, kind: input, shape index: {}]   ;;  %s948_s5 = inlined_call_operand.vmem [shape: f32[2,32,1], index: 5, kind: input, shape index: {}]   ;;  %s949_s6 = inlined_call_operand.vmem [shape: f32[3,64], index: 6, kind: input, shape index: {}]   ;;  %s950_s7 = inlined_call_operand.vmem [shape: f32[8,2], index: 7, kind: output, shape index: {}]  }
   0x1   :  { %13 = vsyncpa [#allocation5], 0  ;;  %s767_s24 = smov [#allocation4]   ;;  %s768_s26 = smov [#allocation2]  }
   0x2   :  { %s30_s25 = sshll.u32 %s767_s24, 4  ;;  %s20_s27 = sshll.u32 %s768_s26, 4  ;;  %s31_s25 = int_to_ptr.vmem [resolvable:$true] %s30_s25  ;;  %s21_s27 = int_to_ptr.vmem [resolvable:$true] %s20_s27 }
   0x3   :  { %s697_s30 = scalar_lea.hbm %s944_s1, 128 }
   0x4   :  { %p698_p0 = scmp.ne.s32.totalorder %s944_s1, %s697_s30  ;;  %p701_p1 = scmp.lt.u32.totalorder %s697_s30, %s944_s1 }
   0x6   :  { %p703_p2 = pnand %p701_p1, %p698_p0 }
   0x8   :  { %706 = shalt.err (!%p703_p2)
}
   0x9   :  { %s707_s12 = scalar_lea.vmem %s31_s25, 128  ;;  %p712_p4 = scmp.lt.s32.totalorder %s31_s25, %s31_s25 }
   0xa   :  { %p708_p3 = scmp.ne.s32.totalorder %s31_s25, %s707_s12  ;;  %p713_p5 = scmp.lt.s32.totalorder %s707_s12, %s707_s12 }
   0xc   :  { %p714_p6 = por %p713_p5, %p712_p4 }
   0xe   :  { %p715_p7 = pnand %p714_p6, %p708_p3 }
  0x10   :  { %718 = shalt.err (!%p715_p7)
}
  0x11   :  { %33 = dma.hbm_to_vmem [thread:$0]  %s944_s1, 128, %s31_s25, [#allocation5]  }
  0x12   :  { %s719_s17 = scalar_lea.hbm %s943_s0, 128 }
  0x13   :  { %p720_p8 = scmp.ne.s32.totalorder %s943_s0, %s719_s17  ;;  %p723_p9 = scmp.lt.u32.totalorder %s719_s17, %s943_s0 }
  0x15   :  { %p725_p10 = pnand %p723_p9, %p720_p8 }
  0x17   :  { %728 = shalt.err (!%p725_p10)
}
  0x18   :  { %s729_s22 = scalar_lea.vmem %s21_s27, 128  ;;  %p734_p12 = scmp.lt.s32.totalorder %s21_s27, %s21_s27 }
  0x19   :  { %p730_p11 = scmp.ne.s32.totalorder %s21_s27, %s729_s22  ;;  %p735_p13 = scmp.lt.s32.totalorder %s729_s22, %s729_s22 }
  0x1b   :  { %p736_p0 = por %p735_p13, %p734_p12 }
  0x1d   :  { %p737_p1 = pnand %p736_p0, %p730_p11 }
  0x1f   :  { %740 = shalt.err (!%p737_p1)
}
  0x20   :  { %23 = dma.hbm_to_vmem [thread:$0]  %s943_s0, 128, %s21_s27, [#allocation3]  }
  0x21   :  { %s769_s24 = smov [#allocation6]   ;;  %s741_s29 = scalar_lea.hbm %s946_s3, 128 }
  0x22   :  { %s42_s25 = sshll.u32 %s769_s24, 4  ;;  %p742_p2 = scmp.ne.s32.totalorder %s946_s3, %s741_s29  ;;  %s43_s25 = int_to_ptr.vmem [resolvable:$true] %s42_s25 }
  0x23   :  { %p745_p3 = scmp.lt.u32.totalorder %s741_s29, %s946_s3 }
  0x25   :  { %p747_p4 = pnand %p745_p3, %p742_p2 }
  0x27   :  { %750 = shalt.err (!%p747_p4)
}
  0x28   :  { %s751_s11 = scalar_lea.vmem %s43_s25, 128  ;;  %p756_p6 = scmp.lt.s32.totalorder %s43_s25, %s43_s25 }
  0x29   :  { %p752_p5 = scmp.ne.s32.totalorder %s43_s25, %s751_s11  ;;  %p757_p7 = scmp.lt.s32.totalorder %s751_s11, %s751_s11 }
  0x2b   :  { %p758_p8 = por %p757_p7, %p756_p6 }
  0x2d   :  { %p759_p9 = pnand %p758_p8, %p752_p5 }
  0x2f   :  { %762 = shalt.err (!%p759_p9)
}
  0x30   :  { %45 = dma.hbm_to_vmem [thread:$0]  %s946_s3, 128, %s43_s25, [#allocation5]  }
  0x31   :  { %763 = dma.done.wait [#allocation3], 128  }
  0x32   :  { %764 = vsyncadd [#allocation3], 4294967168 }
  0x33   :  { %765 = dma.done.wait [#allocation5], 256  }
  0x34   :  { %766 = vsyncadd [#allocation5], 4294967040  ;;  %v770_v0 = vmov 0.0|0.0   ;;  %v771_v1 = vmov 0.0   ;;  %vm772_vm0 = vmmov 0   ;;  %vm66_vm1 = vcmask 64512  }
  0x35   :  { %662 = vmatprep.subr.bf16.mxu1 %v770_v0  ;;  %606 = vmatprep.subr.mxu0 %v771_v1  ;;  %v63_v2 = vld [vmem:[%s945_s2] sm:$0xff]  ;;  %v64_v3 = vld [vmem:[%s945_s2 + $0x8] sm:$0xff]  ;;  %v65_v4 = vld [vmem:[#allocation6] sm:$0xff]  ;;  %vm140_vm2 = vcmask 130048   ;;  %vm235_vm3 = vcmask 261120   ;;  %s773_s0 = smov 96  }
  0x36   :  { %608 = vmatprep.mubr.msk.f32.mxu0 %vm772_vm0, %v771_v1  ;;  %615 = vmatprep.mubr.msk.f32.mxu1 %vm772_vm0, %v771_v1  ;;  %v663_v5 = vpack.c.bf16 %v64_v3, %v63_v2  ;;  %v62_v6 = vld [vmem:[#allocation4] sm:$0xff]  ;;  %v61_v7 = vld [vmem:[#allocation2] sm:$0xff]  ;;  %v223_v11 = vld [vmem:[%s947_s4 + $0x10] sm:$0xff]  ;;  %s774_s1 = smov 1   ;;  %vm548_vm4 = vcmask 7168   ;;  %vm556_vm5 = vcmask 15360  }
  0x37   :  { %607 = vmatpush3.msra.mxu0 %v65_v4  ;;  %v221_v8 = vld [vmem:[%s947_s4] sm:$0xff]  ;;  %v222_v9 = vld [vmem:[%s947_s4 + $0x8] sm:$0xff]  ;;  %v224_v12 = vld [vmem:[%s947_s4 + $0x18] sm:$0xff] }
  0x38   :  { %609 = vmatmul.mubr.msk.f32.vlgmr.msra.gmra.mrb[0].mxu0 %vm66_vm1, %v62_v6  ;;  %665 = vmatprep.subr.bf16.mxu0 %v770_v0  ;;  %v666_v10 = vpack.c.bf16 %v222_v9, %v221_v8  ;;  %v669_v13 = vpack.c.bf16 %v224_v12, %v223_v11  ;;  %v567_v14 = vld [vmem:[%s947_s4 + $0x20] sm:$0xff]  ;;  %v568_v15 = vld [vmem:[%s947_s4 + $0x28] sm:$0xff]  ;;  %v569_v16 = vld [vmem:[%s947_s4 + $0x30] sm:$0xff] }
  0x39   :  { %664 = vmatpush3.bf16.msra.mxu1 %v663_v5  ;;  %626 = vmatprep.mubr.msk.f32.mxu0 %vm772_vm0, %v771_v1  ;;  %v672_v17 = vpack.c.bf16 %v568_v15, %v567_v14  ;;  %v570_v18 = vld [vmem:[%s947_s4 + $0x38] sm:$0xff]  ;;  %v566_v23 = vld [vmem:[%s949_s6] ss:$0 sm:$0xff]  ;;  %v390_v27 = vld [vmem:[%s948_s5 + $0x8] sm:$0xff] }
  0x3a   :  { %671 = vmatprep.subr.bf16.mxu1 %v770_v0  ;;  %667 = vmatpush3.bf16.msra.mxu0 %v666_v10  ;;  %v675_v19 = vpack.c.bf16 %v570_v18, %v569_v16  ;;  %v389_v26 = vld [vmem:[%s948_s5] sm:$0xff]  ;;  %v391_v32 = vld [vmem:[%s948_s5 + $0x10] sm:$0xff]  ;;  %v392_v33 = vld [vmem:[%s948_s5 + $0x18] sm:$0xff] }
  0x3b   :  { %668 = vmatprep.subr.bf16.mxu0 %v770_v0  ;;  %v678_v29 = vpack.c.bf16 %v390_v27, %v389_v26  ;;  %v571_v31 = vld [vmem:[%s949_s6 + $0x1] ss:$0 sm:$0xff]  ;;  %v681_v34 = vpack.c.bf16 %v392_v33, %v391_v32  ;;  %v576_v36 = vld [vmem:[%s948_s5 + $0x28] sm:$0xff]  ;;  %v577_v39 = vld [vmem:[%s948_s5 + $0x30] sm:$0xff] }
  0x3c   :  { %616 = vmatmul.mubr.msk.f32.vlgmr.msra.gmra.mrb[0].mxu1 %vm140_vm2, %v61_v7  ;;  %v575_v35 = vld [vmem:[%s948_s5 + $0x20] sm:$0xff]  ;;  %v578_v40 = vld [vmem:[%s948_s5 + $0x38] sm:$0xff] }
  0x3d   :  { %637 = vmatprep.mubr.msk.f32.mxu1 %vm772_vm0, %v771_v1  ;;  %673 = vmatpush3.bf16.msra.mxu1 %v672_v17  ;;  %v684_v37 = vpack.c.bf16 %v576_v36, %v575_v35  ;;  %v687_v41 = vpack.c.bf16 %v578_v40, %v577_v39  ;;  %v580_v55 = vld [vmem:[%s949_s6 + $0x2] ss:$0 sm:$0xff] }
  0x3e   :  { %670 = vmatpush3.bf16.msra.mxu0 %v669_v13  ;;  %674 = vmatprep.subr.bf16.mxu1 %v770_v0 }
  0x3f   :  { %677 = vmatprep.subr.bf16.mxu0 %v770_v0 }
  0x41   :  { %676 = vmatpush3.bf16.msra.mxu1 %v675_v19 }
  0x42   :  { %683 = vmatprep.subr.bf16.mxu1 %v770_v0 }
 0x10b   :  { %v136_v20 = vpop.f32.mrb[0].mxu0 }
 0x10c   :  { %v610_v21 = vpop.f32.mrb[1].mxu0 }
 0x10f   :  { %v210_v22 = vpop.f32.mrb[0].mxu1 }
 0x110   :  { %v211_v24 = vadd.f32 %v210_v22, %v136_v20  ;;  %v617_v25 = vpop.f32.mrb[1].mxu1 }
 0x112   :  { %v219_v28 = vadd.f32 %v566_v23, %v211_v24 }
 0x114   :  { %v220_v30 = vmax.f32 %v219_v28, 0.0 }
 0x116   :  { %310 = vrot.lane.b32.xlu0 %v220_v30, %s773_s0  ;;  %627 = vmatmul.mubr.msk.f32.vlgmr.msra.gmra.mrb[2].mxu0 %vm235_vm3, %v220_v30 }
 0x117   :  { %679 = vmatpush3.bf16.msra.mxu0 %v678_v29  ;;  %648 = vmatprep.mubr.msk.f32.mxu0 %vm772_vm0, %v771_v1 }
 0x118   :  { %680 = vmatprep.subr.bf16.mxu0 %v770_v0 }
 0x11a   :  { %313 = vrot.lane.b32.xlu0 %v571_v31, %s773_s0 }
 0x11b   :  { %682 = vmatpush3.bf16.msra.mxu0 %v681_v34 }
 0x188   :  { %v311_v38 = vpop.permute.xlu0 %310 }
 0x189   :  { %638 = vmatmul.mubr.msk.f32.vlgmr.msra.gmra.mrb[2].mxu1 %vm235_vm3, %v311_v38 }
 0x18a   :  { %685 = vmatpush3.bf16.msra.mxu1 %v684_v37  ;;  %659 = vmatprep.mubr.msk.f32.mxu1 %vm772_vm0, %v771_v1 }
 0x18b   :  { %686 = vmatprep.subr.bf16.mxu1 %v770_v0 }
 0x18c   :  { %v314_v46 = vpop.permute.xlu0 %313 }
 0x18e   :  { %688 = vmatpush3.bf16.msra.mxu1 %v687_v41 }
 0x1e9   :  { %v305_v42 = vpop.f32.mrb[2].mxu0 }
 0x1ea   :  { %v306_v43 = vadd.f32 %v571_v31, %v305_v42  ;;  %v628_v44 = vpop.f32.mrb[3].mxu0 }
 0x1ec   :  { %v309_v45 = vmax.f32 %v306_v43, 0.0 }
 0x1ee   :  { %649 = vmatmul.mubr.msk.f32.vlgmr.msra.gmra.mrb[4].mxu0 %vm235_vm3, %v309_v45 }
 0x25c   :  { %v384_v47 = vpop.f32.mrb[2].mxu1 }
 0x25d   :  { %v385_v48 = vadd.f32 %v384_v47, %v314_v46  ;;  %v639_v49 = vpop.f32.mrb[3].mxu1 }
 0x25f   :  { %v388_v50 = vmax.f32 %v385_v48, 0.0 }
 0x261   :  { %660 = vmatmul.mubr.msk.f32.vlgmr.msra.gmra.mrb[4].mxu1 %vm235_vm3, %v388_v50 }
 0x2c1   :  { %v462_v51 = vpop.f32.mrb[4].mxu0 }
 0x2c2   :  { %v650_v52 = vpop.f32.mrb[5].mxu0 }
 0x334   :  { %v540_v53 = vpop.f32.mrb[4].mxu1 }
 0x335   :  { %545 = vrot.lane.b32.xlu1 %v540_v53, %s774_s1  ;;  %v661_v54 = vpop.f32.mrb[5].mxu1 }
 0x3a7   :  { %v546_v56 = vpop.permute.xlu1 %545 }
 0x3a8   :  { %v549_v57 = vsel %vm548_vm4, %v462_v51, %v546_v56 }
 0x3a9   :  { %v555_v58 = vadd.f32 %v580_v55, %v549_v57 }
 0x3ab   :  { %557 = vst.msk [vmem:[%s950_s7] sm:$0xff] %vm556_vm5, %v555_v58 }
 0x3ac   :  { %562 = vsyncpa [#allocation3], 1 }
 0x3ad   :  { %563 = vsyncpa [#allocation5], 1 }

</bundles_post_ra>
